<compile_context>
chip_gen: v6e
topology: v6e:2x2x1
jax: 0.10.0
libtpu: 0.0.40
codegen_flags: <defaults>
</compile_context>

<pallas_src>
import functools

import jax
import jax.numpy as jnp
from jax import lax
from jax.experimental import pallas as pl
from jax.experimental.pallas import tpu as pltpu


def _round_up(x, m):
    return (x + m - 1) // m * m


def _choose_tile(hw, c, itemsize, block_bytes):
    """Lane tile THW (multiple of 128) so one logits block is ~block_bytes."""
    per_lane = max(1, c * itemsize)
    cap = max(128, (block_bytes // per_lane) // 128 * 128)
    hw128 = _round_up(hw, 128)
    if hw128 <= cap:
        return hw128
    # Prefer an exact divisor of hw (no wasted tail lanes) if one exists
    # within 2x of the target block size; otherwise take the cap and mask
    # the tail block in-kernel.
    for k in range(cap // 128, max(cap // 256, 0), -1):
        t = 128 * k
        if hw % t == 0:
            return t
    return cap


def _canon_alpha(alpha, num_classes):
    """Mirror the PyTorch module's alpha handling; returns (C, 1) f32."""
    if isinstance(alpha, (float, int)) and not isinstance(alpha, bool):
        a = jnp.asarray([alpha, 1.0 - alpha], dtype=jnp.float32)
    else:
        a = jnp.asarray(alpha, dtype=jnp.float32).reshape(-1)
    if a.shape[0] != num_classes:
        raise ValueError(
            f"alpha has {a.shape[0]} entries but input has {num_classes} classes")
    return a.reshape(num_classes, 1)


def _vmem_limit(c, thw, x_itemsize, t_itemsize):
    """Scoped-VMEM budget from actual block sizes (v7x has only 64 MiB physical)."""
    blk_x = c * thw * x_itemsize
    blk_t = thw * t_itemsize
    blk_o = thw * 4
    temps = 8 * c * thw * 4          # generous bound on in-kernel f32 temporaries
    need = 2 * (blk_x + blk_t + blk_o) + temps + (2 << 20)
    try:
        phys = int(pltpu.get_tpu_info().vmem_capacity_bytes)
    except Exception:
        phys = 64 * 1024 * 1024      # v7x per-TensorCore floor
    return int(min(max(need, 32 * 1024 * 1024), phys - (8 << 20)))


def _focal_kernel(*refs, gamma, hw, thw, j_inner, has_alpha, mask_tail):
    if has_alpha:
        x_ref, t_ref, a_ref, o_ref = refs
    else:
        x_ref, t_ref, o_ref = refs
        a_ref = None

    jo = pl.program_id(1)
    ji = pl.program_id(2)

    @pl.when(ji == 0)
    def _():
        o_ref[...] = jnp.zeros_like(o_ref)

    x = x_ref[0].astype(jnp.float32)             # (C, T)  lane-dense
    t = t_ref[0].astype(jnp.int32)               # (1, T)  widened int8 -> int32

    valid = None
    if mask_tail:
        # The implicit edge block holds undefined data past hw; build a
        # lane-validity mask and *select* (never multiply) it away so
        # NaN/Inf garbage can never poison the accumulator.
        start = (jo * j_inner + ji) * thw
        lane = lax.broadcasted_iota(jnp.int32, (1, thw), 1)
        valid = (lane + start) < hw              # (1, T) bool
        x = jnp.where(valid, x, 0.0)

    # log_softmax over the class (sublane) axis == F.log_softmax(dim=1) on
    # the module's flattened (M, C) view.
    m = jnp.max(x, axis=0, keepdims=True)        # (1, T)
    z = x - m
    lse = jnp.log(jnp.sum(jnp.exp(z), axis=0, keepdims=True))
    logp = z - lse                               # (C, T)

    # gather(1, target) as a one-hot masked reduction over the small C axis.
    cls = lax.broadcasted_iota(jnp.int32, logp.shape, 0)
    onehot = (cls == t).astype(jnp.float32)      # (C, T)
    logpt = jnp.sum(logp * onehot, axis=0, keepdims=True)   # (1, T)
    pt = jnp.exp(logpt)
    om = 1.0 - pt

    g = float(gamma)
    if g.is_integer() and 0 <= int(g) <= 8:
        # integer gamma (default 2): cheap VPU multiplies, no pow/exp/log.
        focal = jnp.ones_like(om)
        for _ in range(int(g)):
            focal = focal * om
    else:
        # exp rounding can make pt marginally > 1; clamp so om**g is not NaN.
        focal = jnp.maximum(om, 0.0) ** g

    if has_alpha:
        at = jnp.sum(a_ref[...] * onehot, axis=0, keepdims=True)   # (1, T)
        loss = -focal * at * logpt
    else:
        loss = -focal * logpt

    if mask_tail:
        loss = jnp.where(valid, loss, 0.0)

    # Accumulate straight into the resident output block (revisited over ji).
    o_ref[...] += loss[None]


def focal_loss(logits, target, *, gamma=2.0, alpha=None, size_average=True,
               block_bytes=2 * 1024 * 1024):
    """logits: (N, C, H, W) float, target: (N, H, W) int -> scalar loss."""
    N, C, H, W = logits.shape
    hw = H * W

    # Free reshape of NCHW — no transpose, keep the input dtype through DMA.
    x = logits.reshape(N, C, hw)
    # int8 targets (C <= 127) cut the second operand's HBM traffic by 4x;
    # widened back to int32 inside the kernel (VPU filler hidden under DMA).
    t_dtype = jnp.int8 if C <= 127 else jnp.int32
    t = target.reshape(N, 1, hw).astype(t_dtype)

    thw = _choose_tile(hw, C, x.dtype.itemsize, block_bytes)
    num_j = pl.cdiv(hw, thw)
    mask_tail = (num_j * thw != hw)

    # Split the spatial grid axis so N * j_outer keeps both v7x TensorCores
    # busy even for batch 1 / odd batch (no effect on single-TC v5e/v6e).
    j_outer = 1
    for d in (2, 3, 4):
        if num_j % d == 0:
            j_outer = d
            break
    j_inner = num_j // j_outer

    if alpha is None:
        # Specialized path: no alpha operand, no extra (C,T) multiply/reduce.
        has_alpha = False
        operands = (x, t)
        extra_specs = []
    else:
        has_alpha = True
        a = _canon_alpha(alpha, C)
        operands = (x, t, a)
        extra_specs = [pl.BlockSpec((C, 1), lambda n, jo, ji: (0, 0))]

    kernel = functools.partial(
        _focal_kernel, gamma=float(gamma), hw=hw, thw=thw,
        j_inner=j_inner, has_alpha=has_alpha, mask_tail=mask_tail)

    in_specs = [
        pl.BlockSpec((1, C, thw), lambda n, jo, ji: (n, 0, jo * j_inner + ji)),
        pl.BlockSpec((1, 1, thw), lambda n, jo, ji: (n, 0, jo * j_inner + ji)),
    ] + extra_specs
    out_spec = pl.BlockSpec((1, 1, thw),
                            lambda n, jo, ji: (n * j_outer + jo, 0, 0))

    cost = pl.CostEstimate(
        flops=int(12 * N * hw * C),
        transcendentals=int(N * hw * (C + 2)),
        bytes_accessed=int(x.size * x.dtype.itemsize + t.size * t.dtype.itemsize
                           + N * j_outer * thw * 4 + (C * 4 if has_alpha else 0)),
    )

    partials = pl.pallas_call(
        kernel,
        out_shape=jax.ShapeDtypeStruct((N * j_outer, 1, thw), jnp.float32),
        grid_spec=pltpu.PrefetchScalarGridSpec(
            num_scalar_prefetch=0,
            grid=(N, j_outer, j_inner),
            in_specs=in_specs,
            out_specs=out_spec,
        ),
        compiler_params=pltpu.CompilerParams(
            dimension_semantics=("parallel", "parallel", "arbitrary"),
            vmem_limit_bytes=_vmem_limit(C, thw, x.dtype.itemsize,
                                         t.dtype.itemsize),
        ),
        cost_estimate=cost,
    )(*operands)

    total = jnp.sum(partials)          # tail lanes are exact zeros
    if size_average:
        return total / jnp.float32(N * hw)
    return total


def _reference(logits, target, *, gamma=2.0, alpha=None, size_average=True):
    """Pure-JAX mirror of the PyTorch FocalLoss.forward."""
    N, C, H, W = logits.shape
    x = jnp.transpose(logits.reshape(N, C, H * W), (0, 2, 1)).reshape(-1, C)
    x = x.astype(jnp.float32)
    t = target.reshape(-1).astype(jnp.int32)
    logp = jax.nn.log_softmax(x, axis=-1)
    logpt = jnp.take_along_axis(logp, t[:, None], axis=1)[:, 0]
    pt = jnp.exp(logpt)
    if alpha is not None:
        at = _canon_alpha(alpha, C)[:, 0][t]
        logpt = logpt * at
    loss = -1.0 * (1.0 - pt) ** gamma * logpt
    return jnp.mean(loss) if size_average else jnp.sum(loss)


if __name__ == "__main__":
    key = jax.random.PRNGKey(0)
    k1, k2, k3, k4, k5, k6 = jax.random.split(key, 6)

    # 1) Module defaults: gamma=2, alpha=None, size_average=True (tile-exact path).
    N, C, H, W = 2, 4, 16, 16
    logits = jax.random.normal(k1, (N, C, H, W), dtype=jnp.float32)
    target = jax.random.randint(k2, (N, H, W), 0, C, dtype=jnp.int32)
    out = jax.block_until_ready(focal_loss(logits, target))
    ref = _reference(logits, target)
    assert jnp.allclose(out, ref, rtol=1e-4, atol=1e-5), (out, ref)

    # 2) alpha + sum variant with a non-128-divisible spatial size (tail-mask path).
    H2, W2 = 10, 10
    logits2 = jax.random.normal(k3, (N, C, H2, W2), dtype=jnp.float32)
    target2 = jax.random.randint(k4, (N, H2, W2), 0, C, dtype=jnp.int32)
    alpha = [0.4, 0.3, 0.2, 0.1]
    out2 = jax.block_until_ready(
        focal_loss(logits2, target2, gamma=2.0, alpha=alpha, size_average=False))
    ref2 = _reference(logits2, target2, gamma=2.0, alpha=alpha, size_average=False)
    assert jnp.allclose(out2, ref2, rtol=1e-4, atol=1e-5), (out2, ref2)

    # 3) fractional gamma, batch=1, tiny forced blocks so the multi-block
    #    accumulation + (N, j_outer, j_inner) dual-core split + edge mask are
    #    all exercised at small shapes.
    H3, W3 = 20, 20
    logits3 = jax.random.normal(k5, (1, C, H3, W3), dtype=jnp.float32)
    target3 = jax.random.randint(k6, (1, H3, W3), 0, C, dtype=jnp.int32)
    out3 = jax.block_until_ready(
        focal_loss(logits3, target3, gamma=1.5, alpha=None, size_average=True,
                   block_bytes=2048))
    ref3 = _reference(logits3, target3, gamma=1.5, alpha=None, size_average=True)
    assert jnp.allclose(out3, ref3, rtol=1e-4, atol=1e-5), (out3, ref3)

    print("KERNEL_OK")
</pallas_src>

<mosaic_0001>
module attributes {stable_mosaic.version = 11 : i64} {
  func.func @_focal_kernel(%arg0: i32, %arg1: i32, %arg2: i32, %arg3: memref<1x4x256xf32, #tpu.memory_space<vmem>>, %arg4: memref<1x1x256xi8, #tpu.memory_space<vmem>>, %arg5: memref<1x1x256xf32, #tpu.memory_space<vmem>>) attributes {dimension_semantics = [#tpu.dimension_semantics<parallel>, #tpu.dimension_semantics<parallel>, #tpu.dimension_semantics<arbitrary>], iteration_bounds = array<i64: 2, 1, 1>, scalar_prefetch = 0 : i64, scratch_operands = 0 : i64, tpu.core_type = #tpu.core_type<tc>, window_params = [{transform_indices = @transform_0, window_bounds = array<i64: 1, 4, 256>}, {transform_indices = @transform_1, window_bounds = array<i64: 1, 1, 256>}, {transform_indices = @transform_2, window_bounds = array<i64: 1, 1, 256>}]} {
    %c0_i32 = arith.constant 0 : i32
    %0 = arith.cmpi eq, %arg2, %c0_i32 : i32
    %1 = arith.extui %0 : i1 to i32
    %c0_i32_0 = arith.constant 0 : i32
    %2 = arith.cmpi ne, %1, %c0_i32_0 : i32
    scf.if %2 {
      %cst_17 = arith.constant 0.000000e+00 : f32
      %39 = vector.broadcast %cst_17 : f32 to vector<1x1x256xf32>
      %c0_18 = arith.constant 0 : index
      %c0_19 = arith.constant 0 : index
      %c0_20 = arith.constant 0 : index
      %40 = vector.load %arg5[%c0_18, %c0_19, %c0_20] : memref<1x1x256xf32, #tpu.memory_space<vmem>>, vector<1x1x256xf32>
      tpu.vector_store %arg5[%c0_18, %c0_19, %c0_20], %39 {strides = array<i32>} : memref<1x1x256xf32, #tpu.memory_space<vmem>>, vector<1x1x256xf32>,
    } else {
    }
    %c0 = arith.constant 0 : index
    %c0_1 = arith.constant 0 : index
    %c0_2 = arith.constant 0 : index
    %3 = vector.load %arg3[%c0, %c0_1, %c0_2] : memref<1x4x256xf32, #tpu.memory_space<vmem>>, vector<1x4x256xf32>
    %4 = vector.shape_cast %3 : vector<1x4x256xf32> to vector<4x256xf32>
    %c0_3 = arith.constant 0 : index
    %c0_4 = arith.constant 0 : index
    %c0_5 = arith.constant 0 : index
    %5 = vector.load %arg4[%c0_3, %c0_4, %c0_5] : memref<1x1x256xi8, #tpu.memory_space<vmem>>, vector<1x1x256xi8>
    %6 = vector.shape_cast %5 : vector<1x1x256xi8> to vector<1x256xi8>
    %7 = arith.extsi %6 : vector<1x256xi8> to vector<1x256xi32>
    %cst = arith.constant dense<0xFF800000> : vector<256xf32>
    %8 = vector.multi_reduction <maximumf>, %4, %cst [0] : vector<4x256xf32> to vector<256xf32>
    %9 = vector.shape_cast %8 : vector<256xf32> to vector<1x256xf32>
    %10 = vector.broadcast %9 : vector<1x256xf32> to vector<4x256xf32>
    %11 = arith.subf %4, %10 : vector<4x256xf32>
    %12 = math.exp %11 : vector<4x256xf32>
    %cst_6 = arith.constant dense<0.000000e+00> : vector<256xf32>
    %13 = vector.multi_reduction <add>, %12, %cst_6 [0] : vector<4x256xf32> to vector<256xf32>
    %14 = vector.shape_cast %13 : vector<256xf32> to vector<1x256xf32>
    %15 = math.log %14 : vector<1x256xf32>
    %16 = vector.broadcast %15 : vector<1x256xf32> to vector<4x256xf32>
    %17 = arith.subf %11, %16 : vector<4x256xf32>
    %18 = tpu.iota {dimensions = array<i32: 0>} : vector<4x256xi32>
    %19 = vector.broadcast %7 : vector<1x256xi32> to vector<4x256xi32>
    %20 = arith.cmpi eq, %18, %19 : vector<4x256xi32>
    %21 = arith.extui %20 : vector<4x256xi1> to vector<4x256xi32>
    %22 = arith.sitofp %21 : vector<4x256xi32> to vector<4x256xf32>
    %23 = arith.mulf %17, %22 : vector<4x256xf32>
    %cst_7 = arith.constant dense<0.000000e+00> : vector<256xf32>
    %24 = vector.multi_reduction <add>, %23, %cst_7 [0] : vector<4x256xf32> to vector<256xf32>
    %25 = vector.shape_cast %24 : vector<256xf32> to vector<1x256xf32>
    %26 = math.exp %25 : vector<1x256xf32>
    %cst_8 = arith.constant 1.000000e+00 : f32
    %27 = vector.broadcast %cst_8 : f32 to vector<1x256xf32>
    %28 = arith.subf %27, %26 : vector<1x256xf32>
    %cst_9 = arith.constant 1.000000e+00 : f32
    %29 = vector.broadcast %cst_9 : f32 to vector<1x256xf32>
    %30 = arith.mulf %29, %28 : vector<1x256xf32>
    %31 = arith.mulf %30, %28 : vector<1x256xf32>
    %cst_10 = arith.constant 0.000000e+00 : f32
    %32 = vector.broadcast %cst_10 : f32 to vector<1x256xf32>
    %33 = arith.subf %32, %31 : vector<1x256xf32>
    %34 = arith.mulf %33, %25 : vector<1x256xf32>
    %c0_11 = arith.constant 0 : index
    %c0_12 = arith.constant 0 : index
    %c0_13 = arith.constant 0 : index
    %35 = vector.load %arg5[%c0_11, %c0_12, %c0_13] : memref<1x1x256xf32, #tpu.memory_space<vmem>>, vector<1x1x256xf32>
    %36 = vector.shape_cast %34 : vector<1x256xf32> to vector<1x1x256xf32>
    %37 = arith.addf %35, %36 : vector<1x1x256xf32>
    %c0_14 = arith.constant 0 : index
    %c0_15 = arith.constant 0 : index
    %c0_16 = arith.constant 0 : index
    %38 = vector.load %arg5[%c0_14, %c0_15, %c0_16] : memref<1x1x256xf32, #tpu.memory_space<vmem>>, vector<1x1x256xf32>
    tpu.vector_store %arg5[%c0_14, %c0_15, %c0_16], %37 {strides = array<i32>} : memref<1x1x256xf32, #tpu.memory_space<vmem>>, vector<1x1x256xf32>,
    return
  }
  func.func @transform_0(%arg0: i32, %arg1: i32, %arg2: i32) -> (i32, i32, i32) {
    %c1_i32 = arith.constant 1 : i32
    %0 = arith.muli %arg1, %c1_i32 : i32
    %1 = arith.addi %0, %arg2 : i32
    %c0_i32 = arith.constant 0 : i32
    %c0_i32_0 = arith.constant 0 : i32
    return %arg0, %c0_i32, %1 : i32, i32, i32
  }
  func.func @transform_1(%arg0: i32, %arg1: i32, %arg2: i32) -> (i32, i32, i32) {
    %c1_i32 = arith.constant 1 : i32
    %0 = arith.muli %arg1, %c1_i32 : i32
    %1 = arith.addi %0, %arg2 : i32
    %c0_i32 = arith.constant 0 : i32
    %c0_i32_0 = arith.constant 0 : i32
    return %arg0, %c0_i32, %1 : i32, i32, i32
  }
  func.func @transform_2(%arg0: i32, %arg1: i32, %arg2: i32) -> (i32, i32, i32) {
    %c1_i32 = arith.constant 1 : i32
    %0 = arith.muli %arg0, %c1_i32 : i32
    %1 = arith.addi %0, %arg1 : i32
    %c0_i32 = arith.constant 0 : i32
    %c0_i32_0 = arith.constant 0 : i32
    %c0_i32_1 = arith.constant 0 : i32
    return %1, %c0_i32, %c0_i32_0 : i32, i32, i32
  }
}

</mosaic_0001>

<bundles_post_ra>
// kernel: tpu_custom_call.1
= control target key start
LH: loop header
LB: loop body
LE: loop exit
PB: predicated region body
PF: predicated region fallthrough
CT: control target
= control target key end

     0   :  { %7 = vsyncpa [#allocation3], 0  ;;  %s885_s0 = inlined_call_operand.hbm [shape: f32[2,4,256], index: 0, kind: input, shape index: {}]   ;;  %s886_s1 = inlined_call_operand.vmem [shape: s8[2,1,256], index: 1, kind: input, shape index: {}]   ;;  %s887_s2 = inlined_call_operand.hbm [shape: f32[2,1,256], index: 2, kind: output, shape index: {}]  }
   0x1   :  { %9 = vsyncpa [#allocation3 + $0x1], 0 }
   0x2   :  { %10 = vsyncpa [#allocation4], 0 }
   0x3   :  { %12 = vsyncpa [#allocation4 + $0x1], 0  ;;  %s718_s9 = smov 0   ;;  %s720_s10 = smov 0  }
   0x4   :  { %s722_s11 = smov 0   ;;  %s724_s12 = smov 0  }
   0x5   :  { %s726_s13 = smov 0   ;;  %s728_s14 = smov 0  }
   0x6 LB: > { %s494_s15 = sadd.s32 4294967295, %s697_s14   ;;  %s495_s16 = sadd.s32 4294967294, %s697_s14   ;;  %s697_s14 = sphi %s728_s14, %s18_s14   ;;  %s693_s13 = sphi %s726_s13, %s901_s13   ;;  %s689_s12 = sphi %s724_s12, %s900_s12   ;;  %s685_s11 = sphi %s722_s11, %s899_s11   ;;  %s681_s10 = sphi %s720_s10, %s898_s10   ;;  %s677_s9 = sphi %s718_s9, %s897_s9  }
   0x7   : > { %s37_s17 = sadd.s32 1, %s693_s13  ;;  %s48_s18 = sadd.s32 1, %s685_s11 }
   0x8   : > { %p39_p0 = scmp.ge.s32.totalorder %s37_s17, 2  ;;  %p55_p1 = scmp.ne.s32.totalorder %s685_s11, %s681_s10 }
   0x9   : > { %p56_p2 = scmp.eq.s32.totalorder %s697_s14, 0  ;;  %p61_p3 = scmp.ne.s32.totalorder %s681_s10, %s677_s9 }
   0xa   : > { %s903_s17 = smov (%p39_p0, %s37_s17), 0  ;;  %p62_p5 = scmp.eq.s32.totalorder %s494_s15, 0 }
   0xb   : > { %p759_p4 = por %p56_p2, %p55_p1  ;;  %s43_s20 = ssub.s32 %s693_s13, %s903_s17 }
   0xc   : > { %p117_p6 = scmp.eq.s32.totalorder %s494_s15, 1  ;;  %p46_p7 = scmp.eq.s32.totalorder %s43_s20, 0 }
   0xd   : > { %p765_p8 = por %p62_p5, %p61_p3  ;;  %p123_p10 = scmp.eq.s32.totalorder %s495_s16, 1 }
   0xe   : > { %p769_p9 = por %p117_p6, %p55_p1  ;;  %p526_p13 = scmp.lt.s32.totalorder %s697_s14, 2 }
   0xf   : > { %s774_s23 = scalar_select %p46_p7, %s685_s11, %s48_s18  }
  0x10   : > { %p776_p11 = por %p123_p10, %p61_p3  ;;  %s143_s25 = sand.u32 1, %s685_s11  }
  0x11   : > { %s498_s26 = sshll.u32 %s143_s25, 3  ;;  %s512_s27 = sshll.u32 %s693_s13, 7 }
  0x12   : > { %s891_s24 = scalar_select %p776_p11, 1, 0 }
  0x13   : > { %s156_s30 = scalar_lea.hbm %s885_s0, %s512_s27  ;;  %s147_s3 = scalar_lea.vmem [#allocation2], %s498_s26 }
  0x14   : > { %s158_s4 = sshll.u32 %s147_s3, 4  ;;  %p789_p0 = pnand %p526_p13, %p759_p4  ;;  %s159_s4 = int_to_ptr.vmem [resolvable:$true] %s158_s4 }
  0x15   : > { %p501_p1 = scmp.ge.s32.totalorder %s697_s14, 1  ;;  %p177_p2 = scmp.lt.s32.totalorder %s697_s14, 3 }
  0x16   : > { %s144_s6 = scalar_lea.sflag [#allocation3], %s143_s25  ;;  %p591_p3 = pneg %p789_p0 }
  0x17   : > { %s602_s7 = scalar_lea.vmem %s159_s4, 128  ;;  %s699_s8 = smov [#allocation2]  }
  0x18   : > { %p603_p5 = scmp.ne.s32.totalorder %s159_s4, %s602_s7  ;;  %s607_s15 = sshll.u32 %s699_s8, 4  ;;  %s608_s15 = int_to_ptr.vmem [resolvable:$false] %s607_s15 }
  0x19   : > { %s609_s16 = scalar_lea.vmem %s608_s15, 256  ;;  %p610_p10 = scmp.lt.s32.totalorder %s159_s4, %s608_s15 }
  0x1a   : > { %p605_p6 = pnand %p603_p5, %p591_p3  ;;  %p611_p12 = scmp.lt.s32.totalorder %s609_s16, %s602_s7 }
  0x1c   : > { %p606_p7 = pneg %p605_p6  ;;  %p612_p4 = por %p611_p12, %p610_p10 }
  0x1e   : > { %p613_p13 = pnand %p612_p4, %p606_p7 }
  0x20   : > { %616 = shalt.err (!%p613_p13)
}
  0x21   : > { %521 = dma.hbm_to_vmem [thread:$0]  (!%p789_p0), %s156_s30, 128, %s159_s4, %s144_s6  }
  0x22   : > { %p178_p11 = pnand %p501_p1, %p177_p2 }
  0x23   : > { %s804_s18 = sand.u32 (!%p178_p11), 1, %s681_s10  }
  0x24   : > { %181 = sbr.rel (%p178_p11) target bundleno = 175 (0xaf), region = 28  ;;  %s502_s19 = sshll.u32 (!%p178_p11), %s804_s18, 3 }
  0x25   : > { %s184_s20 = scalar_lea.sflag (!%p178_p11), [#allocation3], %s804_s18  ;;  %s187_s25 = scalar_lea.vmem (!%p178_p11), [#allocation2], %s502_s19 }
  0x29   : > { %668 = dma.done.wait (%p765_p8), %s184_s20, 128  }
  0x2a   : > { %670 = vsyncadd (%p765_p8), %s184_s20, 4294967168  ;;  %s503_s26 = sshll.u32 %s804_s18, 1  ;;  %p221_p12 = scmp.lt.s32.totalorder %s689_s12, 1  ;;  %v235_v0 = vlaneseq  ;;  %v700_v3 = vmov 0.0   ;;  %vm246_vm1 = vcmask 1043456   ;;  %v240_v6 = vld [vmem:[%s187_s25] sm:$0xff] }
  0x2b   : > { %s821_s28 = scalar_lea.vmem [#allocation5], %s503_s26  ;;  %v244_v9 = vcombine.high %v240_v6, %v240_v6  ;;  %v247_v10 = vsel %vm246_vm1, %v240_v6, -inf  ;;  %s513_s4 = sshll.u32 %s689_s12, 5 }
  0x2c   : > { %s222_s27 = scalar_select %p221_p12, %s689_s12, 1  ;;  %vm815_vm0 = vcmp.lt.s32.totalorder %v235_v0, 256  ;;  %v819_v2 = vshrl.u32 %v235_v0, 7  ;;  %v248_v11 = vrot.slane %v247_v10, 4 }
  0x2d   : > { %239 = vst.msk [vmem:[%s821_s28] sm:$0x3] %vm815_vm0, %v700_v3  ;;  %v254_v12 = vsel %vm246_vm1, %v244_v9, -inf  ;;  %s393_s5 = sshll.u32 %s821_s28, 4  ;;  %s391_s8 = scalar_lea.hbm %s887_s2, %s513_s4  ;;  %s394_s5 = int_to_ptr.vmem [resolvable:$true] %s393_s5 }
  0x2e   : > { %s504_s21 = sshll.u32 %s222_s27, 1  ;;  %v298_v4 = vsub.s32 0, %v819_v2  ;;  %v302_v5 = vsub.s32 4, %v819_v2  ;;  %v249_v15 = vmax.f32 %v247_v10, %v248_v11  ;;  %v255_v16 = vrot.slane %v254_v12, 4  ;;  %s378_s15 = scalar_lea.sflag [#allocation4], %s804_s18 }
  0x2f   : > { %s227_s3 = scalar_lea.vmem %s886_s1, %s504_s21  ;;  %s617_s16 = scalar_lea.vmem %s394_s5, 32 }
  0x30   : > { %v241_v7 = vld [vmem:[%s227_s3] sm:$0x3]  ;;  %v250_v19 = vrot.slane %v249_v15, 2  ;;  %v256_v20 = vmax.f32 %v254_v12, %v255_v16  ;;  %p618_p8 = scmp.ne.s32.totalorder %s394_s5, %s617_s16  ;;  %s702_s19 = smov [#allocation5]  }
  0x31   : > { %v242_v8 = vunpack.c.0.s8 %v241_v7  ;;  %s621_s20 = sshll.u32 %s702_s19, 4  ;;  %s622_s20 = int_to_ptr.vmem [resolvable:$false] %s621_s20 }
  0x32   : > { %v251_v21 = vmax.f32 %v249_v15, %v250_v19  ;;  %v257_v22 = vrot.slane %v256_v20, 2  ;;  %p619_p11 = pnand %p618_p8, %p769_p9  ;;  %s623_s12 = scalar_lea.vmem %s622_s20, 64 }
  0x33   : > { %v299_v13 = vrot.slane %v242_v8, %v298_v4  ;;  %v303_v14 = vrot.slane %v242_v8, %v302_v5  ;;  %p624_p1 = scmp.lt.s32.totalorder %s394_s5, %s622_s20  ;;  %p625_p2 = scmp.lt.s32.totalorder %s623_s12, %s617_s16 }
  0x34   : > { %v252_v26 = vrot.slane %v251_v21, 1  ;;  %v258_v27 = vmax.f32 %v256_v20, %v257_v22  ;;  %p620_p0 = pneg %p619_p11 }
  0x35   : > { %v307_v17 = vrot.slane %v299_v13, %v298_v4  ;;  %v311_v18 = vrot.slane %v303_v14, %v298_v4  ;;  %v701_v14 = vmov 1966171168   ;;  %p626_p3 = por %p625_p2, %p624_p1 }
  0x36   : > { %v253_v28 = vmax.f32 %v251_v21, %v252_v26  ;;  %v259_v29 = vrot.slane %v258_v27, 1  ;;  %v357_v15 = vunpack.c.l.s4 %v701_v14 }
  0x37   : > { %vm312_vm2 = vcmp.eq.s32.totalorder %v819_v2, %v307_v17  ;;  %vm313_vm3 = vcmp.eq.s32.totalorder %v819_v2, %v311_v18  ;;  %p627_p5 = pnand %p626_p3, %p620_p0 }
  0x38   : > { %v505_v23 = vsel %vm312_vm2, 1.0, %v700_v3  ;;  %v506_v24 = vsel %vm313_vm3, 1.0, %v700_v3  ;;  %v260_v30 = vmax.f32 %v258_v27, %v259_v29  ;;  %v358_v21 = vunpack.c.0.s8 %v357_v15 }
  0x39   : > { %v320_v25 = vcombine.low %v505_v23, %v506_v24 }
  0x3a   : > { %v263_v31 = vcombine.low %v253_v28, %v260_v30  ;;  %v352_v28 = vld [vmem:[%s821_s28] sm:$0x3] }
  0x3c   : > { %v265_v32 = vsub.f32 %v240_v6, %v263_v31 }
  0x3e   : > { %v266_v33 = vmul.f32 1.442695, %v265_v32 }
  0x40   : > { %579 = vpow2.f32 %v266_v33 }
  0x4d   : > { %v580_v34 = vpop.eup %579 }
  0x4e   : > { %v269_v35 = vcombine.high %v580_v34, %v580_v34  ;;  %v271_v36 = vsel %vm246_vm1, %v580_v34, 0.0 }
  0x4f   : > { %v272_v37 = vrot.slane %v271_v36, 4 }
  0x50   : > { %v278_v38 = vsel %vm246_vm1, %v269_v35, 0.0 }
  0x51   : > { %v273_v39 = vadd.f32 %v272_v37, %v271_v36  ;;  %v279_v40 = vrot.slane %v278_v38, 4 }
  0x53   : > { %v274_v41 = vrot.slane %v273_v39, 2  ;;  %v280_v42 = vadd.f32 %v279_v40, %v278_v38 }
  0x55   : > { %v275_v43 = vadd.f32 %v274_v41, %v273_v39  ;;  %v281_v44 = vrot.slane %v280_v42, 2 }
  0x57   : > { %v276_v45 = vrot.slane %v275_v43, 1  ;;  %v282_v46 = vadd.f32 %v281_v44, %v280_v42 }
  0x59   : > { %v277_v47 = vadd.f32 %v276_v45, %v275_v43  ;;  %v283_v48 = vrot.slane %v282_v46, 1 }
  0x5b   : > { %v284_v49 = vadd.f32 %v283_v48, %v282_v46  ;;  %581 = vlog2.f32 %v277_v47 }
  0x5d   : > { %583 = vlog2.f32 %v284_v49 }
  0x68   : > { %v582_v50 = vpop.eup %581 }
  0x69   : > { %v286_v51 = vmul.f32 0.6931472, %v582_v50 }
  0x6a   : > { %v584_v52 = vpop.eup %583 }
  0x6b   : > { %v288_v53 = vmul.f32 0.6931472, %v584_v52 }
  0x6d   : > { %v291_v54 = vcombine.low %v286_v51, %v288_v53 }
  0x6f   : > { %v293_v55 = vsub.f32 %v265_v32, %v291_v54 }
  0x71   : > { %v322_v56 = vmul.f32 %v320_v25, %v293_v55  ;;  %v361_v25 = vsub.s32 %v358_v21, %v819_v2 }
  0x73   : > { %v324_v57 = vcombine.high %v322_v56, %v322_v56  ;;  %v326_v58 = vsel %vm246_vm1, %v322_v56, 0.0 }
  0x74   : > { %v327_v59 = vrot.slane %v326_v58, 4 }
  0x75   : > { %v333_v60 = vsel %vm246_vm1, %v324_v57, 0.0 }
  0x76   : > { %v328_v61 = vadd.f32 %v327_v59, %v326_v58  ;;  %v334_v62 = vrot.slane %v333_v60, 4 }
  0x78   : > { %v329_v63 = vrot.slane %v328_v61, 2  ;;  %v335_v0 = vadd.f32 %v334_v62, %v333_v60 }
  0x7a   : > { %v330_v3 = vadd.f32 %v329_v63, %v328_v61  ;;  %v336_v4 = vrot.slane %v335_v0, 2 }
  0x7c   : > { %v331_v5 = vrot.slane %v330_v3, 1  ;;  %v337_v6 = vadd.f32 %v336_v4, %v335_v0 }
  0x7e   : > { %v332_v7 = vadd.f32 %v331_v5, %v330_v3  ;;  %v338_v8 = vrot.slane %v337_v6, 1 }
  0x80   : > { %v339_v9 = vadd.f32 %v338_v8, %v337_v6  ;;  %v340_v10 = vmul.f32 1.442695, %v332_v7 }
  0x82   : > { %585 = vpow2.f32 %v340_v10  ;;  %v342_v11 = vmul.f32 1.442695, %v339_v9 }
  0x84   : > { %587 = vpow2.f32 %v342_v11 }
  0x8f   : > { %v586_v12 = vpop.eup %585 }
  0x90   : > { %v344_v13 = vsub.f32 1.0, %v586_v12 }
  0x91   : > { %v588_v16 = vpop.eup %587 }
  0x92   : > { %v345_v17 = vsub.f32 1.0, %v588_v16  ;;  %v346_v18 = vmul.f32 %v344_v13, %v344_v13 }
  0x94   : > { %v347_v19 = vmul.f32 %v345_v17, %v345_v17  ;;  %v348_v20 = vsub.f32 0.0, %v346_v18 }
  0x96   : > { %v349_v22 = vsub.f32 0.0, %v347_v19  ;;  %v350_v23 = vmul.f32 %v348_v20, %v332_v7 }
  0x98   : > { %v351_v24 = vmul.f32 %v349_v22, %v339_v9 }
  0x9a   : > { %v355_v26 = vcombine.low %v350_v23, %v351_v24 }
  0x9c   : > { %v362_v27 = vrot.slane %v355_v26, %v361_v25 }
  0x9e   : > { %v369_v29 = vrot.slane %v362_v27, %v361_v25 }
  0xa0   : > { %v371_v30 = vadd.f32 %v369_v29, %v352_v28 }
  0xa2   : > { %376 = vst.msk [vmem:[%s821_s28] sm:$0x3] %vm815_vm0, %v371_v30 }
  0xa3   : > { %630 = shalt.err (!%p627_p5)
}
  0xa4   : > { %s631_s25 = scalar_lea.hbm %s391_s8, 32  ;;  %s635_s27 = scalar_lea.hbm %s887_s2, 64 }
  0xa5   : > { %p632_p6 = scmp.ne.s32.totalorder %s391_s8, %s631_s25  ;;  %p636_p4 = scmp.lt.s32.totalorder %s391_s8, %s887_s2 }
  0xa6   : > { %p637_p13 = scmp.lt.s32.totalorder %s635_s27, %s631_s25 }
  0xa7   : > { %p633_p7 = pnand %p632_p6, %p769_p9 }
  0xa8   : > { %p638_p12 = por %p637_p13, %p636_p4 }
  0xa9   : > { %p634_p10 = pneg %p633_p7 }
  0xab   : > { %p639_p8 = pnand %p638_p12, %p634_p10 }
  0xad   : > { %642 = shalt.err (!%p639_p8)
}
  0xae   : > { %516 = dma.vmem_to_hbm [thread:$0]  (%p769_p9), %s394_s5, 32, %s391_s8, %s378_s15  }
  0xaf PF: > { %s405_s29 = sand.u32 1, %s677_s9   ;;  %p895_p11 = scmp.ne.s32.totalorder %s891_s24, 0 }
  0xb0   : > { %p896_p0 = scmp.ge.s32.totalorder %s697_s14, 2  ;;  %s406_s30 = scalar_lea.sflag [#allocation4], %s405_s29 }
  0xb2   : > { %p523_p1 = pnand %p896_p0, %p895_p11 }
  0xb4   : > { %p524_p2 = pneg %p523_p1 }
  0xb6   : > { %672 = dma.done.wait (%p524_p2), %s406_s30, 32  }
  0xb7   : > { %674 = vsyncadd (%p524_p2), %s406_s30, 4294967264  ;;  %s18_s14 = sadd.s32 1, %s697_s14   ;;  %s897_s9 = smov %s681_s10 }
  0xb8   : > { %p15_p3 = scmp.ge.s32.totalorder %s18_s14, 4   ;;  %s898_s10 = smov %s685_s11 }
  0xb9   : > { %s899_s11 = smov %s774_s23  ;;  %s900_s12 = smov %s693_s13 }
  0xba   : > { %s901_s13 = smov %s903_s17  ;;  %17 = sbr.rel (!%p15_p3) target bundleno = 6 (0x6), region = 80 }
  0xbf   :  { %411 = vsyncpa [#allocation3], 1 }
  0xc0   :  { %413 = vsyncpa [#allocation3 + $0x1], 1 }
  0xc1   :  { %414 = vsyncpa [#allocation4], 1 }
  0xc2   :  { %416 = vsyncpa [#allocation4 + $0x1], 1 }

</bundles_post_ra>
